<compile_context>
chip_gen: v6e
topology: v6e:2x2x1
jax: 0.10.0
libtpu: 0.0.40
codegen_flags: <defaults>
</compile_context>

<pallas_src>
import functools

import jax
import jax.numpy as jnp
from jax.experimental import pallas as pl
from jax.experimental.pallas import tpu as pltpu

DOWNSAMPLE = 16
_VMEM = pltpu.MemorySpace.VMEM


def _round_up(n, m):
    return ((n + m - 1) // m) * m


def _pick_hw_tile(hw):
    # Largest lane-aligned tile that divides the BEV pixel count.
    for t in (2048, 1024, 512, 256, 128):
        if hw % t == 0:
            return t
    return hw


def _default_vmem_limit():
    # ~3/4 of physical VMEM, capped at 96 MiB (v5e/v6e: 128 MiB physical, v7x: 64 MiB).
    try:
        phys = getattr(pltpu.get_tpu_info(), "vmem_capacity_bytes", None)
        if phys:
            return int(min(phys * 3 // 4, 96 * 1024 * 1024))
    except Exception:
        pass
    return 48 * 1024 * 1024


# --------------------------------------------------------------------------------
# Generic linear (matmul + bias) kernel: conv-as-matmul and fused 1x1-conv heads.
# --------------------------------------------------------------------------------
def _linear_kernel(x_ref, w_ref, b_ref, o_ref):
    o_ref[...] = (
        jnp.dot(
            x_ref[...].astype(jnp.bfloat16),
            w_ref[...].astype(jnp.bfloat16),
            preferred_element_type=jnp.float32,
        )
        + b_ref[...]
    )


def linear_pallas(x, w, b, *, block_m=512, vmem_limit=None):
    M, K = x.shape
    N = w.shape[1]
    if vmem_limit is None:
        vmem_limit = _default_vmem_limit()

    # Lane-dense output: pad N to a multiple of 128 (unmasked stores), slice outside.
    Np = _round_up(N, 128)
    if Np != N:
        w = jnp.pad(w, ((0, 0), (0, Np - N)))
        b = jnp.pad(b, ((0, Np - N),))

    # Tile M into <=block_m-row blocks (multiple of 8); pad M so blocks divide exactly.
    bm = min(block_m, _round_up(M, 8))
    Mp = _round_up(M, bm)
    if Mp != M:
        x = jnp.pad(x, ((0, Mp - M), (0, 0)))

    out = pl.pallas_call(
        _linear_kernel,
        out_shape=jax.ShapeDtypeStruct((Mp, Np), jnp.float32),
        grid=(Mp // bm,),
        in_specs=[
            pl.BlockSpec((bm, K), lambda i: (i, 0), memory_space=_VMEM),
            pl.BlockSpec((K, Np), lambda i: (0, 0), memory_space=_VMEM),
            pl.BlockSpec((1, Np), lambda i: (0, 0), memory_space=_VMEM),
        ],
        out_specs=pl.BlockSpec((bm, Np), lambda i: (i, 0), memory_space=_VMEM),
        compiler_params=pltpu.CompilerParams(
            dimension_semantics=("parallel",),
            vmem_limit_bytes=int(vmem_limit),
        ),
    )(x, w, b.reshape(1, Np))
    return out[:M, :N]


# --------------------------------------------------------------------------------
# Shared helper: build an (n_rows, P) bilinear interpolation matrix inside a kernel.
# x, y : (1, P) float pixel coords.  idx_fn maps clipped integer (x, y) -> flat index.
# Out-of-bounds corners get weight 0 (so invalid points can be encoded by pushing
# their coordinates out of bounds on the host).  One jnp.where select per corner.
# --------------------------------------------------------------------------------
def _interp_matrix(x, y, n_rows, bound_x, bound_y, idx_fn):
    P = x.shape[-1]
    iota = jax.lax.broadcasted_iota(jnp.int32, (n_rows, P), 0)  # built once per call
    x0 = jnp.floor(x)
    y0 = jnp.floor(y)
    wmat = jnp.zeros((n_rows, P), jnp.float32)
    for dx, dy in ((0, 0), (1, 0), (0, 1), (1, 1)):
        xi = x0 + dx
        yi = y0 + dy
        w = (1.0 - jnp.abs(x - xi)) * (1.0 - jnp.abs(y - yi))
        inb = (xi >= 0) & (xi <= bound_x - 1) & (yi >= 0) & (yi <= bound_y - 1)
        w = jnp.where(inb, w, 0.0)                 # (1, P) -- cheap
        xc = jnp.clip(xi, 0, bound_x - 1).astype(jnp.int32)
        yc = jnp.clip(yi, 0, bound_y - 1).astype(jnp.int32)
        idx = idx_fn(xc, yc)                       # (1, P) int32
        wmat = wmat + jnp.where(iota == idx, w, 0.0)   # single select per corner
    return wmat


# --------------------------------------------------------------------------------
# IPM kernel: bilinear-sample one camera's feature map at the projected BEV-tile grid
# and accumulate (sum over cameras via the "arbitrary" grid axis) into the output block.
# grid = (BT, num_hw_tiles, nN)   -- cameras last (reduction axis).
# --------------------------------------------------------------------------------
def _ipm_fuse_kernel(feat_ref, coords_ref, o_ref, *, fH, fW):
    cam = pl.program_id(2)

    @pl.when(cam == 0)
    def _():
        o_ref[...] = jnp.zeros_like(o_ref)

    feat = feat_ref[0, 0]            # (camC, Pin)
    c = coords_ref[0, 0]             # (2, hw_tile)  row0 = u (width), row1 = v (height)
    u_x = c[0:1, :]
    u_y = c[1:2, :]
    wmat = _interp_matrix(u_x, u_y, fH * fW, fW, fH, lambda xc, yc: yc * fW + xc)
    o_ref[0] += jnp.dot(
        feat.astype(jnp.bfloat16),
        wmat.astype(jnp.bfloat16),
        preferred_element_type=jnp.float32,
    )


def ipm_fuse(feats, coords, fH, fW, *, vmem_limit):
    BT, nN, camC, pin = feats.shape
    HW = coords.shape[-1]
    hw_tile = _pick_hw_tile(HW)
    n_hw = HW // hw_tile
    kern = functools.partial(_ipm_fuse_kernel, fH=fH, fW=fW)
    return pl.pallas_call(
        kern,
        out_shape=jax.ShapeDtypeStruct((BT, camC, HW), jnp.float32),
        grid=(BT, n_hw, nN),
        in_specs=[
            pl.BlockSpec((1, 1, camC, pin), lambda b, h, n: (b, n, 0, 0),
                         memory_space=_VMEM),
            pl.BlockSpec((1, 1, 2, hw_tile), lambda b, h, n: (b, n, 0, h),
                         memory_space=_VMEM),
        ],
        out_specs=pl.BlockSpec((1, camC, hw_tile), lambda b, h, n: (b, 0, h),
                               memory_space=_VMEM),
        compiler_params=pltpu.CompilerParams(
            dimension_semantics=("parallel", "parallel", "arbitrary"),
            vmem_limit_bytes=int(vmem_limit),
        ),
    )(feats, coords)


# --------------------------------------------------------------------------------
# Temporal fusion kernel: warp frames t>0 into frame-0 coordinates (bilinear) and take
# the elementwise max over time.  grid = (B, num_hw_tiles, T-1) with the time axis as the
# reduction ("arbitrary") axis; one previous frame (full source HW) is resident per step.
# --------------------------------------------------------------------------------
def _temporal_fuse_kernel(td0_ref, tdp_ref, coords_ref, o_ref, *, H, W):
    t = pl.program_id(2)

    @pl.when(t == 0)
    def _():
        o_ref[...] = td0_ref[...]     # frame-0 destination tile initializes the max

    c = coords_ref[0, 0]              # (2, hw_tile)  row0 -> H index, row1 -> W index
    g_x = c[0:1, :]
    g_y = c[1:2, :]
    wmat = _interp_matrix(g_x, g_y, H * W, H, W, lambda xc, yc: xc * W + yc)
    warped = jnp.dot(
        tdp_ref[0, 0].astype(jnp.bfloat16),
        wmat.astype(jnp.bfloat16),
        preferred_element_type=jnp.float32,
    )                                 # (C, hw_tile)
    o_ref[0] = jnp.maximum(o_ref[0], warped)


def temporal_fuse(topdown, coords, H, W, *, vmem_limit):
    B, T, C, HW = topdown.shape
    hw_tile = _pick_hw_tile(HW)
    n_hw = HW // hw_tile
    td0 = topdown[:, 0]               # (B, C, HW)     destination frame
    tdp = topdown[:, 1:]              # (B, T-1, C, HW) frames to warp (full source HW)
    kern = functools.partial(_temporal_fuse_kernel, H=H, W=W)
    return pl.pallas_call(
        kern,
        out_shape=jax.ShapeDtypeStruct((B, C, HW), jnp.float32),
        grid=(B, n_hw, T - 1),
        in_specs=[
            pl.BlockSpec((1, C, hw_tile), lambda b, h, t: (b, 0, h),
                         memory_space=_VMEM),
            pl.BlockSpec((1, 1, C, HW), lambda b, h, t: (b, t, 0, 0),
                         memory_space=_VMEM),
            pl.BlockSpec((1, 1, 2, hw_tile), lambda b, h, t: (b, t, 0, h),
                         memory_space=_VMEM),
        ],
        out_specs=pl.BlockSpec((1, C, hw_tile), lambda b, h, t: (b, 0, h),
                               memory_space=_VMEM),
        compiler_params=pltpu.CompilerParams(
            dimension_semantics=("parallel", "parallel", "arbitrary"),
            vmem_limit_bytes=int(vmem_limit),
        ),
    )(td0, tdp, coords)


# --------------------------------------------------------------------------------
# Parameter init and forward glue.
# --------------------------------------------------------------------------------
def init_params(key, cin, camC, outC, embedded_dim):
    k1, k2, k3 = jax.random.split(key, 3)
    kdim = cin * DOWNSAMPLE * DOWNSAMPLE
    return {
        "cam_w": 0.02 * jax.random.normal(k1, (kdim, camC), jnp.float32),
        "cam_b": jnp.zeros((camC,), jnp.float32),
        "sem_w": 0.1 * jax.random.normal(k2, (camC, outC), jnp.float32),
        "sem_b": jnp.zeros((outC,), jnp.float32),
        "emb_w": 0.1 * jax.random.normal(k3, (camC, embedded_dim), jnp.float32),
        "emb_b": jnp.zeros((embedded_dim,), jnp.float32),
    }


def _rot2d(a):
    c = jnp.cos(a)
    s = jnp.sin(a)
    return jnp.stack([jnp.stack([c, -s], -1), jnp.stack([s, c], -1)], -2)


def temporal_ipm_net_forward(params, xbound, ybound, points, points_mask, x, rots,
                             trans, intrins, post_rots, post_trans, translation,
                             yaw_pitch_roll):
    del points, points_mask  # unused by the reference forward as well
    vmem_limit = _default_vmem_limit()

    B, T, N, Cin, imH, imW = x.shape
    ds = DOWNSAMPLE
    fH, fW = imH // ds, imW // ds
    camC = params["cam_w"].shape[1]
    H = int(round((xbound[1] - xbound[0]) / xbound[2]))
    W = int(round((ybound[1] - ybound[0]) / ybound[2]))
    HW = H * W
    BT = B * T

    # ---- get_cam_feats: 16x16 stride-16 patch-embedding conv as a tiled Pallas matmul ----
    # TODO(synk): in-kernel patch extraction (blocking over (BT*N, fH) with a
    #             (1, Cin, ds, imW) input block) not implemented; this transpose goes
    #             through XLA/HBM once.
    patches = (
        x.reshape(BT * N, Cin, fH, ds, fW, ds)
        .transpose(0, 2, 4, 1, 3, 5)
        .reshape(BT * N * fH * fW, Cin * ds * ds)
    )
    feats = linear_pallas(patches, params["cam_w"], params["cam_b"],
                          vmem_limit=vmem_limit)
    feats = feats.reshape(BT, N, fH * fW, camC).transpose(0, 1, 3, 2)  # (BT,N,camC,Pin)

    # ---- get_Ks_RTs_and_post_RTs (plain JAX glue) ----
    intr = intrins.reshape(BT, N, 3, 3)
    rot = rots.reshape(BT, N, 3, 3)
    tr = trans.reshape(BT, N, 3)
    prot = post_rots.reshape(BT, N, 3, 3)
    ptr = post_trans.reshape(BT, N, 3)
    eye4 = jnp.tile(jnp.eye(4, dtype=jnp.float32), (BT, N, 1, 1))
    Ks = eye4.at[:, :, :3, :3].set(intr)
    Rs = eye4.at[:, :, :3, :3].set(jnp.swapaxes(rot, -1, -2))
    Ts = eye4.at[:, :, :3, 3].set(-tr)
    RTs = Rs @ Ts
    post_RTs = eye4.at[:, :, :3, :3].set(prot).at[:, :, :3, 3].set(ptr)
    scale = jnp.diag(jnp.array([1.0 / ds, 1.0 / ds, 1.0, 1.0], jnp.float32))
    post_RTs = scale @ post_RTs

    # ---- IPM: project z=0 BEV plane grid into each camera feature map ----
    xs = xbound[0] + jnp.arange(H, dtype=jnp.float32) * xbound[2]
    ys = ybound[0] + jnp.arange(W, dtype=jnp.float32) * ybound[2]
    gx, gy = jnp.meshgrid(xs, ys, indexing="ij")  # (H, W); BEV flat index = i*W + j
    plane = jnp.stack(
        [gx.reshape(-1), gy.reshape(-1), jnp.zeros(HW, jnp.float32),
         jnp.ones(HW, jnp.float32)], axis=0)      # (4, HW)

    P = post_RTs @ Ks @ RTs                       # (BT, N, 4, 4)
    proj = jnp.einsum("bnij,jp->bnip", P, plane)  # (BT, N, 4, HW)
    z = proj[:, :, 2:3, :]
    eps = 1e-3
    valid = z > eps                               # (BT, N, 1, HW)
    zs = jnp.where(valid, z, 1.0)
    # Invalid points are pushed out of bounds (weight 0 in the kernel) -> no `valid` DMA.
    u = jnp.where(valid, proj[:, :, 0:1, :] / zs, -2.0)   # feature-map width index
    v = jnp.where(valid, proj[:, :, 1:2, :] / zs, -2.0)   # feature-map height index
    coords = jnp.concatenate([u, v], axis=2)      # (BT, N, 2, HW)

    topdown = ipm_fuse(feats, coords, fH, fW, vmem_limit=vmem_limit)  # (BT, camC, HW)
    topdown = topdown.reshape(B, T, camC, HW)

    # ---- temporal_fusion ----
    yaw = yaw_pitch_roll[..., 0]                  # (B, T)
    if T == 1:
        fused = topdown[:, 0]
    else:
        grid2d = plane[:2]                        # (2, HW)
        rot0 = _rot2d(yaw[:, 1:])                 # (B, T-1, 2, 2)
        trans0 = translation[:, 1:, :2][..., None]                     # (B, T-1, 2, 1)
        rot1 = _rot2d(jnp.repeat(yaw[:, 0:1], T - 1, axis=1))          # (B, T-1, 2, 2)
        trans1 = jnp.repeat(translation[:, 0:1, :2][..., None], T - 1, axis=1)
        g = jnp.einsum("btji,jp->btip", rot1, grid2d)  # rot1^T @ grid
        g = g + trans1 - trans0
        g = jnp.einsum("btij,btjp->btip", rot0, g)
        px = (g[:, :, 0:1, :] - xbound[0]) / xbound[2]   # -> H index
        py = (g[:, :, 1:2, :] - ybound[0]) / ybound[2]   # -> W index
        coords_t = jnp.concatenate([px, py], axis=2)     # (B, T-1, 2, HW)
        fused = temporal_fuse(topdown, coords_t, H, W, vmem_limit=vmem_limit)

    # ---- bevencode: fused (sem | emb) 1x1-conv heads in one lane-dense matmul ----
    xflat = fused.transpose(0, 2, 1).reshape(B * HW, camC)
    outC = params["sem_w"].shape[1]
    embedded_dim = params["emb_w"].shape[1]
    head_w = jnp.concatenate([params["sem_w"], params["emb_w"]], axis=1)
    head_b = jnp.concatenate([params["sem_b"], params["emb_b"]], axis=0)
    heads = linear_pallas(xflat, head_w, head_b, vmem_limit=vmem_limit)
    sem = heads[:, :outC].reshape(B, H, W, outC).transpose(0, 3, 1, 2)
    emb = heads[:, outC:outC + embedded_dim].reshape(
        B, H, W, embedded_dim).transpose(0, 3, 1, 2)
    return sem, emb


# --------------------------------------------------------------------------------
if __name__ == "__main__":
    key = jax.random.PRNGKey(0)
    B, T, N = 1, 2, 2
    Cin, imH, imW = 3, 64, 64
    camC, outC, embedded_dim = 16, 4, 8
    xbound = (-8.0, 8.0, 1.0)   # -> BEV H = 16
    ybound = (-8.0, 8.0, 1.0)   # -> BEV W = 16

    ks = jax.random.split(key, 8)
    x = jax.random.normal(ks[0], (B, T, N, Cin, imH, imW), jnp.float32)
    rots = jnp.tile(jnp.eye(3, dtype=jnp.float32), (B, T, N, 1, 1)) \
        + 0.01 * jax.random.normal(ks[1], (B, T, N, 3, 3), jnp.float32)
    trans = jax.random.normal(ks[2], (B, T, N, 3), jnp.float32)
    intrins = jnp.tile(
        jnp.array([[32.0, 0.0, 32.0], [0.0, 32.0, 32.0], [0.0, 0.0, 1.0]], jnp.float32),
        (B, T, N, 1, 1))
    post_rots = jnp.tile(jnp.eye(3, dtype=jnp.float32), (B, T, N, 1, 1))
    post_trans = jnp.zeros((B, T, N, 3), jnp.float32)
    translation = 0.5 * jax.random.normal(ks[3], (B, T, 3), jnp.float32)
    yaw_pitch_roll = 0.1 * jax.random.normal(ks[4], (B, T, 3), jnp.float32)
    points = jnp.zeros((B, T, 1, 3), jnp.float32)      # unused by forward
    points_mask = jnp.zeros((B, T, 1), jnp.float32)    # unused by forward

    params = init_params(ks[5], Cin, camC, outC, embedded_dim)

    sem, emb = temporal_ipm_net_forward(
        params, xbound, ybound, points, points_mask, x, rots, trans, intrins,
        post_rots, post_trans, translation, yaw_pitch_roll)
    jax.block_until_ready((sem, emb))
    assert sem.shape == (B, outC, 16, 16) and emb.shape == (B, embedded_dim, 16, 16)
    print("KERNEL_OK")
</pallas_src>

<mosaic_0001>
module attributes {stable_mosaic.version = 11 : i64} {
  func.func @_linear_kernel(%arg0: i32, %arg1: memref<64x768xf32, #tpu.memory_space<vmem>>, %arg2: memref<768x128xf32, #tpu.memory_space<vmem>>, %arg3: memref<1x128xf32, #tpu.memory_space<vmem>>, %arg4: memref<64x128xf32, #tpu.memory_space<vmem>>) attributes {dimension_semantics = [#tpu.dimension_semantics<parallel>], iteration_bounds = array<i64: 1>, scalar_prefetch = 0 : i64, scratch_operands = 0 : i64, tpu.core_type = #tpu.core_type<tc>, window_params = [{transform_indices = @transform_0, window_bounds = array<i64: 64, 768>}, {pipeline_mode = #tpu.pipeline_mode<synchronous>, transform_indices = @transform_1, window_bounds = array<i64: 768, 128>}, {pipeline_mode = #tpu.pipeline_mode<synchronous>, transform_indices = @transform_2, window_bounds = array<i64: 1, 128>}, {transform_indices = @transform_3, window_bounds = array<i64: 64, 128>}]} {
    %c0 = arith.constant 0 : index
    %c0_0 = arith.constant 0 : index
    %0 = vector.load %arg1[%c0, %c0_0] : memref<64x768xf32, #tpu.memory_space<vmem>>, vector<64x768xf32>
    %1 = arith.truncf %0 : vector<64x768xf32> to vector<64x768xbf16>
    %c0_1 = arith.constant 0 : index
    %c0_2 = arith.constant 0 : index
    %2 = vector.load %arg2[%c0_1, %c0_2] : memref<768x128xf32, #tpu.memory_space<vmem>>, vector<768x128xf32>
    %3 = arith.truncf %2 : vector<768x128xf32> to vector<768x128xbf16>
    %cst = arith.constant dense<0.000000e+00> : vector<64x128xf32>
    %4 = tpu.matmul %1, %3, %cst {dimension_numbers = #tpu.dot_dimension_numbers<[1], [0], [0], [1], [0, 0, 1, 1], [], []>} : vector<64x768xbf16>, vector<768x128xbf16>, vector<64x128xf32> -> vector<64x128xf32>
    %c0_3 = arith.constant 0 : index
    %c0_4 = arith.constant 0 : index
    %5 = vector.load %arg3[%c0_3, %c0_4] : memref<1x128xf32, #tpu.memory_space<vmem>>, vector<1x128xf32>
    %6 = vector.broadcast %5 : vector<1x128xf32> to vector<64x128xf32>
    %7 = arith.addf %4, %6 : vector<64x128xf32>
    %c0_5 = arith.constant 0 : index
    %c0_6 = arith.constant 0 : index
    %8 = vector.load %arg4[%c0_5, %c0_6] : memref<64x128xf32, #tpu.memory_space<vmem>>, vector<64x128xf32>
    tpu.vector_store %arg4[%c0_5, %c0_6], %7 {strides = array<i32>} : memref<64x128xf32, #tpu.memory_space<vmem>>, vector<64x128xf32>,
    return
  }
  func.func @transform_0(%arg0: i32) -> (i32, i32) {
    %c0_i32 = arith.constant 0 : i32
    %c0_i32_0 = arith.constant 0 : i32
    return %arg0, %c0_i32 : i32, i32
  }
  func.func @transform_1(%arg0: i32) -> (i32, i32) {
    %c0_i32 = arith.constant 0 : i32
    %c0_i32_0 = arith.constant 0 : i32
    %c0_i32_1 = arith.constant 0 : i32
    return %c0_i32, %c0_i32_0 : i32, i32
  }
  func.func @transform_2(%arg0: i32) -> (i32, i32) {
    %c0_i32 = arith.constant 0 : i32
    %c0_i32_0 = arith.constant 0 : i32
    %c0_i32_1 = arith.constant 0 : i32
    return %c0_i32, %c0_i32_0 : i32, i32
  }
  func.func @transform_3(%arg0: i32) -> (i32, i32) {
    %c0_i32 = arith.constant 0 : i32
    %c0_i32_0 = arith.constant 0 : i32
    return %arg0, %c0_i32 : i32, i32
  }
}

</mosaic_0001>

<bundles_post_ra>
// kernel: tpu_custom_call.1
= control target key start
LH: loop header
LB: loop body
LE: loop exit
PB: predicated region body
PF: predicated region fallthrough
CT: control target
= control target key end

     0   :  { %8 = vsyncpa [#allocation3], 0  ;;  %s752_s0 = inlined_call_operand.hbm [shape: f32[64,768], index: 0, kind: input, shape index: {}]   ;;  %s753_s1 = inlined_call_operand.hbm [shape: f32[768,128], index: 1, kind: input, shape index: {}]   ;;  %s754_s2 = inlined_call_operand.vmem [shape: f32[1,128], index: 2, kind: input, shape index: {}]   ;;  %s755_s3 = inlined_call_operand.hbm [shape: f32[64,128], index: 3, kind: output, shape index: {}]  }
   0x1   :  { %9 = vsyncpa [#allocation6], 0 }
   0x2   :  { %10 = vsyncpa [#allocation4], 0  ;;  %s698_s12 = smov [#allocation2]  }
   0x3   :  { %s16_s13 = sshll.u32 %s698_s12, 4  ;;  %s17_s13 = int_to_ptr.vmem [resolvable:$true] %s16_s13 }
   0x4   :  { %s640_s14 = scalar_lea.vmem %s17_s13, 6144  ;;  %p645_p1 = scmp.lt.s32.totalorder %s17_s13, %s17_s13 }
   0x5   :  { %p641_p0 = scmp.ne.s32.totalorder %s17_s13, %s640_s14  ;;  %p646_p2 = scmp.lt.s32.totalorder %s640_s14, %s640_s14 }
   0x7   :  { %p647_p3 = por %p646_p2, %p645_p1 }
   0x9   :  { %p648_p4 = pnand %p647_p3, %p641_p0 }
   0xb   :  { %651 = shalt.err (!%p648_p4)
}
   0xc   :  { %s699_s15 = smov 768   ;;  %s700_s16 = smov 48  }
   0xd   :  { %22 = dma.hbm_to_vmem [thread:$0]  %s752_s0, 6144, %s17_s13, [#allocation3], %s699_s15, %s699_s15, %s700_s16  }
   0xe   :  { %s701_s19 = smov [#allocation5]  }
   0xf   :  { %s28_s20 = sshll.u32 %s701_s19, 4  ;;  %s29_s20 = int_to_ptr.vmem [resolvable:$true] %s28_s20 }
  0x10   :  { %s660_s21 = scalar_lea.vmem %s29_s20, 12288  ;;  %p665_p6 = scmp.lt.s32.totalorder %s29_s20, %s29_s20 }
  0x11   :  { %p661_p5 = scmp.ne.s32.totalorder %s29_s20, %s660_s21  ;;  %p666_p7 = scmp.lt.s32.totalorder %s660_s21, %s660_s21 }
  0x13   :  { %p667_p8 = por %p666_p7, %p665_p6 }
  0x15   :  { %p668_p9 = pnand %p667_p8, %p661_p5 }
  0x17   :  { %671 = shalt.err (!%p668_p9)
}
  0x18   :  { %s702_s22 = smov 128   ;;  %s703_s23 = smov 8  }
  0x19   :  { %34 = dma.hbm_to_vmem [thread:$0]  %s753_s1, 12288, %s29_s20, [#allocation6], %s702_s22, %s702_s22, %s703_s23  }
  0x1a   :  { %692 = dma.done.wait [#allocation3], 6144  }
  0x1b   :  { %693 = vsyncadd [#allocation3], 4294961152 }
  0x1c   :  { %694 = dma.done.wait [#allocation6], 12288  }
  0x1d   :  { %695 = vsyncadd [#allocation6], 4294955008  ;;  %v146_v0 = vld [vmem:[#allocation5 + $0xf0] sm:$0xff]  ;;  %v147_v1 = vld [vmem:[#allocation5 + $0xf8] sm:$0xff] }
  0x1e   :  { %v178_v2 = vld [vmem:[#allocation5 + $0x1f0] sm:$0xff]  ;;  %v227_v3 = vpack.c.bf16 %v147_v1, %v146_v0  ;;  %v179_v4 = vld [vmem:[#allocation5 + $0x1f8] sm:$0xff]  ;;  %v144_v11 = vld [vmem:[#allocation5 + $0xe0] sm:$0xff] }
  0x1f   :  { %v130_v5 = vld [vmem:[#allocation5 + $0x70] sm:$0xff]  ;;  %v131_v6 = vld [vmem:[#allocation5 + $0x78] sm:$0xff]  ;;  %v243_v7 = vpack.c.bf16 %v179_v4, %v178_v2  ;;  %v145_v13 = vld [vmem:[#allocation5 + $0xe8] sm:$0xff] }
  0x20   :  { %v219_v8 = vpack.c.bf16 %v131_v6, %v130_v5  ;;  %v162_v9 = vld [vmem:[#allocation5 + $0x170] sm:$0xff]  ;;  %v163_v10 = vld [vmem:[#allocation5 + $0x178] sm:$0xff]  ;;  %489 = vmatprep.subr.bf16.mxu0 %v227_v3  ;;  %v176_v14 = vld [vmem:[#allocation5 + $0x1e0] sm:$0xff]  ;;  %v226_v16 = vpack.c.bf16 %v145_v13, %v144_v11 }
  0x21   :  { %v235_v12 = vpack.c.bf16 %v163_v10, %v162_v9  ;;  %v177_v15 = vld [vmem:[#allocation5 + $0x1e8] sm:$0xff]  ;;  %529 = vmatprep.subr.bf16.mxu1 %v243_v7  ;;  %v128_v18 = vld [vmem:[#allocation5 + $0x60] sm:$0xff]  ;;  %v142_v23 = vld [vmem:[#allocation5 + $0xd0] sm:$0xff] }
  0x22   :  { %490 = vmatpush3.bf16.msra.mxu0 %v219_v8  ;;  %v242_v17 = vpack.c.bf16 %v177_v15, %v176_v14  ;;  %v129_v19 = vld [vmem:[#allocation5 + $0x68] sm:$0xff]  ;;  %v160_v20 = vld [vmem:[#allocation5 + $0x160] sm:$0xff]  ;;  %v143_v24 = vld [vmem:[#allocation5 + $0xd8] sm:$0xff] }
  0x23   :  { %530 = vmatpush3.bf16.msra.mxu1 %v235_v12  ;;  %v218_v21 = vpack.c.bf16 %v129_v19, %v128_v18  ;;  %v161_v22 = vld [vmem:[#allocation5 + $0x168] sm:$0xff]  ;;  %491 = vmatprep.subr.bf16.mxu0 %v226_v16  ;;  %v225_v26 = vpack.c.bf16 %v143_v24, %v142_v23  ;;  %v174_v27 = vld [vmem:[#allocation5 + $0x1d0] sm:$0xff]  ;;  %v175_v28 = vld [vmem:[#allocation5 + $0x1d8] sm:$0xff] }
  0x24   :  { %531 = vmatprep.subr.bf16.mxu1 %v242_v17  ;;  %v234_v25 = vpack.c.bf16 %v161_v22, %v160_v20  ;;  %v126_v29 = vld [vmem:[#allocation5 + $0x50] sm:$0xff]  ;;  %v241_v30 = vpack.c.bf16 %v175_v28, %v174_v27  ;;  %v127_v31 = vld [vmem:[#allocation5 + $0x58] sm:$0xff]  ;;  %v140_v35 = vld [vmem:[#allocation5 + $0xc0] sm:$0xff] }
  0x25   :  { %v158_v32 = vld [vmem:[#allocation5 + $0x150] sm:$0xff]  ;;  %v159_v33 = vld [vmem:[#allocation5 + $0x158] sm:$0xff]  ;;  %v217_v34 = vpack.c.bf16 %v127_v31, %v126_v29  ;;  %v141_v36 = vld [vmem:[#allocation5 + $0xc8] sm:$0xff] }
  0x26   :  { %492 = vmatpush3.bf16.msra.mxu0 %v218_v21  ;;  %v172_v37 = vld [vmem:[#allocation5 + $0x1c0] sm:$0xff]  ;;  %v233_v38 = vpack.c.bf16 %v159_v33, %v158_v32  ;;  %v224_v39 = vpack.c.bf16 %v141_v36, %v140_v35  ;;  %v173_v40 = vld [vmem:[#allocation5 + $0x1c8] sm:$0xff]  ;;  %v138_v46 = vld [vmem:[#allocation5 + $0xb0] sm:$0xff] }
  0x27   :  { %532 = vmatpush3.bf16.msra.mxu1 %v234_v25  ;;  %493 = vmatprep.subr.bf16.mxu0 %v225_v26  ;;  %v124_v41 = vld [vmem:[#allocation5 + $0x40] sm:$0xff]  ;;  %v125_v42 = vld [vmem:[#allocation5 + $0x48] sm:$0xff]  ;;  %v240_v43 = vpack.c.bf16 %v173_v40, %v172_v37  ;;  %v139_v47 = vld [vmem:[#allocation5 + $0xb8] sm:$0xff] }
  0x28   :  { %533 = vmatprep.subr.bf16.mxu1 %v241_v30  ;;  %v156_v44 = vld [vmem:[#allocation5 + $0x140] sm:$0xff]  ;;  %v157_v45 = vld [vmem:[#allocation5 + $0x148] sm:$0xff]  ;;  %v170_v48 = vld [vmem:[#allocation5 + $0x1b0] sm:$0xff]  ;;  %v216_v50 = vpack.c.bf16 %v125_v42, %v124_v41  ;;  %v223_v52 = vpack.c.bf16 %v139_v47, %v138_v46 }
  0x29   :  { %v171_v49 = vld [vmem:[#allocation5 + $0x1b8] sm:$0xff]  ;;  %v232_v51 = vpack.c.bf16 %v157_v45, %v156_v44  ;;  %v122_v53 = vld [vmem:[#allocation5 + $0x30] sm:$0xff]  ;;  %v136_v58 = vld [vmem:[#allocation5 + $0xa0] sm:$0xff] }
  0x2a   :  { %494 = vmatpush3.bf16.msra.mxu0 %v217_v34  ;;  %v123_v54 = vld [vmem:[#allocation5 + $0x38] sm:$0xff]  ;;  %v154_v55 = vld [vmem:[#allocation5 + $0x130] sm:$0xff]  ;;  %v239_v56 = vpack.c.bf16 %v171_v49, %v170_v48  ;;  %v137_v59 = vld [vmem:[#allocation5 + $0xa8] sm:$0xff] }
  0x2b   :  { %534 = vmatpush3.bf16.msra.mxu1 %v233_v38  ;;  %495 = vmatprep.subr.bf16.mxu0 %v224_v39  ;;  %v155_v57 = vld [vmem:[#allocation5 + $0x138] sm:$0xff]  ;;  %v168_v60 = vld [vmem:[#allocation5 + $0x1a0] sm:$0xff]  ;;  %v169_v61 = vld [vmem:[#allocation5 + $0x1a8] sm:$0xff]  ;;  %v215_v62 = vpack.c.bf16 %v123_v54, %v122_v53  ;;  %v222_v0 = vpack.c.bf16 %v137_v59, %v136_v58 }
  0x2c   :  { %535 = vmatprep.subr.bf16.mxu1 %v240_v43  ;;  %v231_v63 = vpack.c.bf16 %v155_v57, %v154_v55  ;;  %v120_v1 = vld [vmem:[#allocation5 + $0x20] sm:$0xff]  ;;  %v121_v2 = vld [vmem:[#allocation5 + $0x28] sm:$0xff]  ;;  %v238_v4 = vpack.c.bf16 %v169_v61, %v168_v60  ;;  %v134_v6 = vld [vmem:[#allocation5 + $0x90] sm:$0xff] }
  0x2d   :  { %v152_v3 = vld [vmem:[#allocation5 + $0x120] sm:$0xff]  ;;  %v153_v5 = vld [vmem:[#allocation5 + $0x128] sm:$0xff]  ;;  %v135_v7 = vld [vmem:[#allocation5 + $0x98] sm:$0xff]  ;;  %v214_v11 = vpack.c.bf16 %v121_v2, %v120_v1 }
  0x2e   :  { %496 = vmatpush3.bf16.msra.mxu0 %v216_v50  ;;  %v166_v8 = vld [vmem:[#allocation5 + $0x190] sm:$0xff]  ;;  %v167_v9 = vld [vmem:[#allocation5 + $0x198] sm:$0xff]  ;;  %v230_v15 = vpack.c.bf16 %v153_v5, %v152_v3  ;;  %v221_v16 = vpack.c.bf16 %v135_v7, %v134_v6  ;;  %v132_v17 = vld [vmem:[#allocation5 + $0x80] sm:$0xff] }
  0x2f   :  { %536 = vmatpush3.bf16.msra.mxu1 %v232_v51  ;;  %497 = vmatprep.subr.bf16.mxu0 %v223_v52  ;;  %v118_v10 = vld [vmem:[#allocation5 + $0x10] sm:$0xff]  ;;  %v119_v12 = vld [vmem:[#allocation5 + $0x18] sm:$0xff]  ;;  %v45_v18 = vld [vmem:[#allocation2 + $0x8] sm:$0xff]  ;;  %v237_v20 = vpack.c.bf16 %v167_v9, %v166_v8 }
  0x30   :  { %537 = vmatprep.subr.bf16.mxu1 %v239_v56  ;;  %v150_v13 = vld [vmem:[#allocation5 + $0x110] sm:$0xff]  ;;  %v151_v14 = vld [vmem:[#allocation5 + $0x118] sm:$0xff]  ;;  %v133_v21 = vld [vmem:[#allocation5 + $0x88] sm:$0xff]  ;;  %v213_v28 = vpack.c.bf16 %v119_v12, %v118_v10 }
  0x31   :  { %v51_v19 = vld [vmem:[#allocation2 + $0x38] sm:$0xff]  ;;  %v53_v24 = vld [vmem:[#allocation2 + $0x48] sm:$0xff]  ;;  %v164_v25 = vld [vmem:[#allocation5 + $0x180] sm:$0xff]  ;;  %v229_v29 = vpack.c.bf16 %v151_v14, %v150_v13  ;;  %v220_v30 = vpack.c.bf16 %v133_v21, %v132_v17 }
  0x32   :  { %498 = vmatpush3.bf16.msra.mxu0 %v215_v62  ;;  %v93_v22 = vpack.c.bf16 %v51_v19, %v45_v18  ;;  %v47_v23 = vld [vmem:[#allocation2 + $0x18] sm:$0xff]  ;;  %v165_v26 = vld [vmem:[#allocation5 + $0x188] sm:$0xff]  ;;  %v116_v31 = vld [vmem:[#allocation5] sm:$0xff] }
  0x33   :  { %538 = vmatpush3.bf16.msra.mxu1 %v231_v63  ;;  %499 = vmatprep.subr.bf16.mxu0 %v222_v0  ;;  %v95_v27 = vpack.c.bf16 %v53_v24, %v47_v23  ;;  %v117_v32 = vld [vmem:[#allocation5 + $0x8] sm:$0xff]  ;;  %v148_v33 = vld [vmem:[#allocation5 + $0x100] sm:$0xff]  ;;  %v236_v34 = vpack.c.bf16 %v165_v26, %v164_v25  ;;  %v210_v36 = vld [vmem:[#allocation5 + $0x2f0] sm:$0xff] }
  0x34   :  { %539 = vmatprep.subr.bf16.mxu1 %v238_v4  ;;  %299 = vmatprep.mubr.bf16.mxu0 %v93_v22  ;;  %v149_v35 = vld [vmem:[#allocation5 + $0x108] sm:$0xff]  ;;  %v211_v37 = vld [vmem:[#allocation5 + $0x2f8] sm:$0xff]  ;;  %v212_v38 = vpack.c.bf16 %v117_v32, %v116_v31  ;;  %v44_v39 = vld [vmem:[#allocation2] sm:$0xff] }
  0x35   :  { %364 = vmatprep.mubr.bf16.mxu1 %v95_v27  ;;  %v50_v40 = vld [vmem:[#allocation2 + $0x30] sm:$0xff]  ;;  %v228_v42 = vpack.c.bf16 %v149_v35, %v148_v33  ;;  %v52_v43 = vld [vmem:[#allocation2 + $0x40] sm:$0xff]  ;;  %v259_v44 = vpack.c.bf16 %v211_v37, %v210_v36  ;;  %v195_v46 = vld [vmem:[#allocation5 + $0x278] sm:$0xff] }
  0x36   :  { %500 = vmatpush3.bf16.msra.mxu0 %v214_v11  ;;  %v46_v41 = vld [vmem:[#allocation2 + $0x10] sm:$0xff]  ;;  %v208_v47 = vld [vmem:[#allocation5 + $0x2e0] sm:$0xff]  ;;  %v209_v48 = vld [vmem:[#allocation5 + $0x2e8] sm:$0xff]  ;;  %v92_v49 = vpack.c.bf16 %v50_v40, %v44_v39 }
  0x37   :  { %540 = vmatpush3.bf16.msra.mxu1 %v230_v15  ;;  %501 = vmatprep.subr.bf16.mxu0 %v221_v16  ;;  %v194_v45 = vld [vmem:[#allocation5 + $0x270] sm:$0xff]  ;;  %v57_v50 = vld [vmem:[#allocation2 + $0x68] sm:$0xff]  ;;  %v63_v51 = vld [vmem:[#allocation2 + $0x98] sm:$0xff]  ;;  %v94_v52 = vpack.c.bf16 %v52_v43, %v46_v41  ;;  %v258_v56 = vpack.c.bf16 %v209_v48, %v208_v47 }
  0x38   :  { %541 = vmatprep.subr.bf16.mxu1 %v237_v20  ;;  %v251_v53 = vpack.c.bf16 %v195_v46, %v194_v45  ;;  %v59_v54 = vld [vmem:[#allocation2 + $0x78] sm:$0xff]  ;;  %v65_v55 = vld [vmem:[#allocation2 + $0xa8] sm:$0xff]  ;;  %v192_v57 = vld [vmem:[#allocation5 + $0x260] sm:$0xff]  ;;  %v99_v59 = vpack.c.bf16 %v63_v51, %v57_v50 }
  0x39   :  { %v193_v58 = vld [vmem:[#allocation5 + $0x268] sm:$0xff]  ;;  %v206_v60 = vld [vmem:[#allocation5 + $0x2d0] sm:$0xff]  ;;  %v207_v61 = vld [vmem:[#allocation5 + $0x2d8] sm:$0xff]  ;;  %v101_v62 = vpack.c.bf16 %v65_v55, %v59_v54 }
  0x3a   :  { %502 = vmatpush3.bf16.msra.mxu0 %v213_v28  ;;  %v250_v63 = vpack.c.bf16 %v193_v58, %v192_v57  ;;  %v56_v0 = vld [vmem:[#allocation2 + $0x60] sm:$0xff]  ;;  %v62_v1 = vld [vmem:[#allocation2 + $0x90] sm:$0xff]  ;;  %v257_v4 = vpack.c.bf16 %v207_v61, %v206_v60  ;;  %v191_v6 = vld [vmem:[#allocation5 + $0x258] sm:$0xff] }
  0x3b   :  { %542 = vmatpush3.bf16.msra.mxu1 %v229_v29  ;;  %503 = vmatprep.subr.bf16.mxu0 %v220_v30  ;;  %v58_v2 = vld [vmem:[#allocation2 + $0x70] sm:$0xff]  ;;  %v64_v3 = vld [vmem:[#allocation2 + $0xa0] sm:$0xff]  ;;  %v205_v8 = vld [vmem:[#allocation5 + $0x2c8] sm:$0xff]  ;;  %v98_v9 = vpack.c.bf16 %v62_v1, %v56_v0 }
  0x3c   :  { %543 = vmatprep.subr.bf16.mxu1 %v236_v34  ;;  %v190_v5 = vld [vmem:[#allocation5 + $0x250] sm:$0xff]  ;;  %v204_v7 = vld [vmem:[#allocation5 + $0x2c0] sm:$0xff]  ;;  %v69_v10 = vld [vmem:[#allocation2 + $0xc8] sm:$0xff]  ;;  %v100_v12 = vpack.c.bf16 %v64_v3, %v58_v2 }
  0x3d   :  { %v75_v11 = vld [vmem:[#allocation2 + $0xf8] sm:$0xff]  ;;  %v249_v13 = vpack.c.bf16 %v191_v6, %v190_v5  ;;  %v77_v15 = vld [vmem:[#allocation2 + $0x108] sm:$0xff]  ;;  %v256_v16 = vpack.c.bf16 %v205_v8, %v204_v7  ;;  %v188_v17 = vld [vmem:[#allocation5 + $0x240] sm:$0xff] }
  0x3e   :  { %504 = vmatpush3.bf16.msra.mxu0 %v212_v38  ;;  %v71_v14 = vld [vmem:[#allocation2 + $0xd8] sm:$0xff]  ;;  %v189_v18 = vld [vmem:[#allocation5 + $0x248] sm:$0xff]  ;;  %v105_v19 = vpack.c.bf16 %v75_v11, %v69_v10  ;;  %v202_v20 = vld [vmem:[#allocation5 + $0x2b0] sm:$0xff] }
  0x3f   :  { %544 = vmatpush3.bf16.msra.mxu1 %v228_v42  ;;  %569 = vmatprep.subr.bf16.mxu0 %v259_v44  ;;  %v203_v21 = vld [vmem:[#allocation5 + $0x2b8] sm:$0xff]  ;;  %v107_v22 = vpack.c.bf16 %v77_v15, %v71_v14  ;;  %v248_v23 = vpack.c.bf16 %v189_v18, %v188_v17  ;;  %v68_v24 = vld [vmem:[#allocation2 + $0xc0] sm:$0xff]  ;;  %v74_v25 = vld [vmem:[#allocation2 + $0xf0] sm:$0xff] }
  0x40   :  { %609 = vmatprep.subr.bf16.mxu1 %v259_v44  ;;  %v70_v26 = vld [vmem:[#allocation2 + $0xd0] sm:$0xff]  ;;  %v76_v27 = vld [vmem:[#allocation2 + $0x100] sm:$0xff]  ;;  %v255_v28 = vpack.c.bf16 %v203_v21, %v202_v20  ;;  %v187_v30 = vld [vmem:[#allocation5 + $0x238] sm:$0xff]  ;;  %v104_v33 = vpack.c.bf16 %v74_v25, %v68_v24 }
  0x41   :  { %300 = vmatmul.mubr.bf16.vlgmr.msra.gmra.mxu0 %v92_v49  ;;  %v186_v29 = vld [vmem:[#allocation5 + $0x230] sm:$0xff]  ;;  %v200_v31 = vld [vmem:[#allocation5 + $0x2a0] sm:$0xff]  ;;  %v201_v32 = vld [vmem:[#allocation5 + $0x2a8] sm:$0xff]  ;;  %v106_v36 = vpack.c.bf16 %v76_v27, %v70_v26 }
  0x42   :  { %365 = vmatmul.mubr.bf16.vlgmr.msra.gmra.mxu1 %v94_v52  ;;  %570 = vmatpush3.bf16.msra.mxu0 %v251_v53  ;;  %v81_v34 = vld [vmem:[#allocation2 + $0x128] sm:$0xff]  ;;  %v87_v35 = vld [vmem:[#allocation2 + $0x158] sm:$0xff]  ;;  %v247_v37 = vpack.c.bf16 %v187_v30, %v186_v29  ;;  %v254_v40 = vpack.c.bf16 %v201_v32, %v200_v31  ;;  %v184_v41 = vld [vmem:[#allocation5 + $0x220] sm:$0xff] }
  0x43   :  { %617 = vmatpush3.bf16.msra.mxu1 %v251_v53  ;;  %571 = vmatprep.subr.bf16.mxu0 %v258_v56  ;;  %v83_v38 = vld [vmem:[#allocation2 + $0x138] sm:$0xff]  ;;  %v89_v39 = vld [vmem:[#allocation2 + $0x168] sm:$0xff]  ;;  %v111_v43 = vpack.c.bf16 %v87_v35, %v81_v34  ;;  %v198_v44 = vld [vmem:[#allocation5 + $0x290] sm:$0xff] }
  0x44   :  { %610 = vmatprep.subr.bf16.mxu1 %v258_v56  ;;  %307 = vmatprep.mubr.bf16.mxu0 %v99_v59  ;;  %v185_v42 = vld [vmem:[#allocation5 + $0x228] sm:$0xff]  ;;  %v199_v45 = vld [vmem:[#allocation5 + $0x298] sm:$0xff]  ;;  %v113_v46 = vpack.c.bf16 %v89_v39, %v83_v38  ;;  %v80_v48 = vld [vmem:[#allocation2 + $0x120] sm:$0xff] }
  0x45   :  { %372 = vmatprep.mubr.bf16.mxu1 %v101_v62  ;;  %v246_v47 = vpack.c.bf16 %v185_v42, %v184_v41  ;;  %v86_v49 = vld [vmem:[#allocation2 + $0x150] sm:$0xff]  ;;  %v88_v51 = vld [vmem:[#allocation2 + $0x160] sm:$0xff]  ;;  %v253_v52 = vpack.c.bf16 %v199_v45, %v198_v44  ;;  %v183_v54 = vld [vmem:[#allocation5 + $0x218] sm:$0xff] }
  0x46   :  { %572 = vmatpush3.bf16.msra.mxu0 %v250_v63  ;;  %v82_v50 = vld [vmem:[#allocation2 + $0x130] sm:$0xff]  ;;  %v196_v55 = vld [vmem:[#allocation5 + $0x280] sm:$0xff]  ;;  %v197_v56 = vld [vmem:[#allocation5 + $0x288] sm:$0xff]  ;;  %v110_v57 = vpack.c.bf16 %v86_v49, %v80_v48 }
  0x47   :  { %618 = vmatpush3.bf16.msra.mxu1 %v250_v63  ;;  %573 = vmatprep.subr.bf16.mxu0 %v257_v4  ;;  %v182_v53 = vld [vmem:[#allocation5 + $0x210] sm:$0xff]  ;;  %v49_v58 = vld [vmem:[#allocation2 + $0x28] sm:$0xff]  ;;  %v55_v59 = vld [vmem:[#allocation2 + $0x58] sm:$0xff]  ;;  %v112_v60 = vpack.c.bf16 %v88_v51, %v82_v50  ;;  %v252_v0 = vpack.c.bf16 %v197_v56, %v196_v55 }
  0x48   :  { %611 = vmatprep.subr.bf16.mxu1 %v257_v4  ;;  %v245_v61 = vpack.c.bf16 %v183_v54, %v182_v53  ;;  %v73_v62 = vld [vmem:[#allocation2 + $0xe8] sm:$0xff]  ;;  %v79_v63 = vld [vmem:[#allocation2 + $0x118] sm:$0xff]  ;;  %v180_v1 = vld [vmem:[#allocation5 + $0x200] sm:$0xff]  ;;  %v97_v3 = vpack.c.bf16 %v55_v59, %v49_v58 }
  0x49   :  { %308 = vmatmul.mubr.bf16.gmra.mxu0 %v98_v9  ;;  %v181_v2 = vld [vmem:[#allocation5 + $0x208] sm:$0xff]  ;;  %v109_v4 = vpack.c.bf16 %v79_v63, %v73_v62  ;;  %v48_v6 = vld [vmem:[#allocation2 + $0x20] sm:$0xff]  ;;  %v54_v7 = vld [vmem:[#allocation2 + $0x50] sm:$0xff] }
  0x4a   :  { %373 = vmatmul.mubr.bf16.gmra.mxu1 %v100_v12  ;;  %574 = vmatpush3.bf16.msra.mxu0 %v249_v13  ;;  %v244_v5 = vpack.c.bf16 %v181_v2, %v180_v1  ;;  %v72_v8 = vld [vmem:[#allocation2 + $0xe0] sm:$0xff]  ;;  %v78_v9 = vld [vmem:[#allocation2 + $0x110] sm:$0xff]  ;;  %v61_v10 = vld [vmem:[#allocation2 + $0x88] sm:$0xff]  ;;  %v96_v14 = vpack.c.bf16 %v54_v7, %v48_v6 }
  0x4b   :  { %619 = vmatpush3.bf16.msra.mxu1 %v249_v13  ;;  %575 = vmatprep.subr.bf16.mxu0 %v256_v16  ;;  %v67_v11 = vld [vmem:[#allocation2 + $0xb8] sm:$0xff]  ;;  %v85_v12 = vld [vmem:[#allocation2 + $0x148] sm:$0xff]  ;;  %v108_v15 = vpack.c.bf16 %v78_v9, %v72_v8  ;;  %v60_v18 = vld [vmem:[#allocation2 + $0x80] sm:$0xff] }
  0x4c   :  { %612 = vmatprep.subr.bf16.mxu1 %v256_v16  ;;  %315 = vmatprep.mubr.bf16.mxu0 %v105_v19  ;;  %v91_v13 = vld [vmem:[#allocation2 + $0x178] sm:$0xff]  ;;  %v103_v16 = vpack.c.bf16 %v67_v11, %v61_v10  ;;  %v66_v19 = vld [vmem:[#allocation2 + $0xb0] sm:$0xff]  ;;  %v84_v20 = vld [vmem:[#allocation2 + $0x140] sm:$0xff] }
  0x4d   :  { %380 = vmatprep.mubr.bf16.mxu1 %v107_v22  ;;  %v115_v17 = vpack.c.bf16 %v91_v13, %v85_v12  ;;  %v90_v21 = vld [vmem:[#allocation2 + $0x170] sm:$0xff]  ;;  %v102_v22 = vpack.c.bf16 %v66_v19, %v60_v18  ;;  %v488_v53 = vld [vmem:[%s754_s2] ss:$0 sm:$0xff]  ;;  %s704_s2 = smov [#allocation7]  }
  0x4e   :  { %576 = vmatpush3.bf16.msra.mxu0 %v248_v23  ;;  %s475_s26 = sshll.u32 %s704_s2, 4  ;;  %s476_s26 = int_to_ptr.vmem [resolvable:$true] %s475_s26 }
  0x4f   :  { %620 = vmatpush3.bf16.msra.mxu1 %v248_v23  ;;  %577 = vmatprep.subr.bf16.mxu0 %v255_v28  ;;  %v114_v23 = vpack.c.bf16 %v90_v21, %v84_v20  ;;  %s672_s27 = scalar_lea.vmem %s476_s26, 1024  ;;  %p677_p11 = scmp.lt.s32.totalorder %s476_s26, %s476_s26 }
  0x50   :  { %613 = vmatprep.subr.bf16.mxu1 %v255_v28  ;;  %p673_p10 = scmp.ne.s32.totalorder %s476_s26, %s672_s27  ;;  %p678_p12 = scmp.lt.s32.totalorder %s672_s27, %s672_s27 }
  0x51   :  { %316 = vmatmul.mubr.bf16.gmra.mxu0 %v104_v33 }
  0x52   :  { %381 = vmatmul.mubr.bf16.gmra.mxu1 %v106_v36  ;;  %578 = vmatpush3.bf16.msra.mxu0 %v247_v37  ;;  %p679_p13 = por %p678_p12, %p677_p11 }
  0x53   :  { %621 = vmatpush3.bf16.msra.mxu1 %v247_v37  ;;  %579 = vmatprep.subr.bf16.mxu0 %v254_v40 }
  0x54   :  { %614 = vmatprep.subr.bf16.mxu1 %v254_v40  ;;  %323 = vmatprep.mubr.bf16.mxu0 %v111_v43  ;;  %p680_p0 = pnand %p679_p13, %p673_p10 }
  0x55   :  { %388 = vmatprep.mubr.bf16.mxu1 %v113_v46 }
  0x56   :  { %580 = vmatpush3.bf16.msra.mxu0 %v246_v47 }
  0x57   :  { %622 = vmatpush3.bf16.msra.mxu1 %v246_v47  ;;  %581 = vmatprep.subr.bf16.mxu0 %v253_v52 }
  0x58   :  { %615 = vmatprep.subr.bf16.mxu1 %v253_v52 }
  0x59   :  { %324 = vmatmul.mubr.bf16.gmra.mxu0 %v110_v57 }
  0x5a   :  { %389 = vmatmul.mubr.bf16.gmra.mxu1 %v112_v60  ;;  %582 = vmatpush3.bf16.msra.mxu0 %v245_v61 }
  0x5b   :  { %623 = vmatpush3.bf16.msra.mxu1 %v245_v61  ;;  %583 = vmatprep.subr.bf16.mxu0 %v252_v0 }
  0x5c   :  { %616 = vmatprep.subr.bf16.mxu1 %v252_v0  ;;  %429 = vmatprep.mubr.bf16.mxu0 %v97_v3 }
  0x5d   :  { %445 = vmatprep.mubr.bf16.mxu1 %v109_v4 }
  0x5e   :  { %584 = vmatpush3.bf16.msra.mxu0 %v244_v5 }
  0x5f   :  { %624 = vmatpush3.bf16.msra.mxu1 %v244_v5 }
  0x61   :  { %430 = vmatmul.mubr.bf16.vlgmr.msra.gmra.mxu0 %v96_v14 }
  0x62   :  { %446 = vmatmul.mubr.bf16.vlgmr.msra.gmra.mxu1 %v108_v15  ;;  %437 = vmatprep.mubr.bf16.mxu0 %v103_v16 }
  0x63   :  { %453 = vmatprep.mubr.bf16.mxu1 %v115_v17 }
  0x69   :  { %438 = vmatmul.mubr.bf16.gmra.mxu0 %v102_v22 }
  0x6a   :  { %454 = vmatmul.mubr.bf16.gmra.mxu1 %v114_v23 }
 0x101   :  { %v505_v24 = vpop.f32.mrf.mxu0 }
 0x102   :  { %v545_v25 = vpop.f32.mrf.mxu1 }
 0x103   :  { %v506_v26 = vpop.f32.mrf.mxu0 }
 0x104   :  { %v546_v27 = vpop.f32.mrf.mxu1  ;;  %v507_v51 = vadd.f32 %v506_v26, %v505_v24 }
 0x105   :  { %v508_v28 = vpop.f32.mrf.mxu0  ;;  %v547_v0 = vadd.f32 %v546_v27, %v545_v25 }
 0x106   :  { %v548_v29 = vpop.f32.mrf.mxu1  ;;  %v302_v58 = vadd.f32 %v507_v51, %v488_v53 }
 0x107   :  { %v509_v30 = vpop.f32.mrf.mxu0 }
 0x108   :  { %v549_v31 = vpop.f32.mrf.mxu1  ;;  %v510_v59 = vadd.f32 %v509_v30, %v508_v28  ;;  %v367_v4 = vadd.f32 %v547_v0, %v302_v58 }
 0x109   :  { %v511_v32 = vpop.f32.mrf.mxu0  ;;  %v550_v14 = vadd.f32 %v549_v31, %v548_v29 }
 0x10a   :  { %v734_v33 = vpop.f32.mrf.mxu1  ;;  %v305_v5 = vadd.f32 %v510_v59, %v488_v53 }
 0x10b   :  { %v512_v34 = vpop.f32.mrf.mxu0 }
 0x10c   :  { %v552_v35 = vpop.f32.mrf.mxu1  ;;  %v513_v6 = vadd.f32 %v512_v34, %v511_v32  ;;  %v370_v20 = vadd.f32 %v550_v14, %v305_v5 }
 0x10d   :  { %v514_v36 = vpop.f32.mrf.mxu0  ;;  %v553_v32 = vadd.f32 %v552_v35, %v734_v33 }
 0x10e   :  { %v736_v37 = vpop.f32.mrf.mxu1  ;;  %v310_v21 = vadd.f32 %v513_v6, %v488_v53 }
 0x10f   :  { %v515_v38 = vpop.f32.mrf.mxu0 }
 0x110   :  { %v738_v39 = vpop.f32.mrf.mxu1  ;;  %v516_v22 = vadd.f32 %v515_v38, %v514_v36 }
 0x111   :  { %v517_v40 = vpop.f32.mrf.mxu0 }
 0x112   :  { %v557_v41 = vpop.f32.mrf.mxu1 }
 0x113   :  { %v518_v42 = vpop.f32.mrf.mxu0 }
 0x114   :  { %v558_v43 = vpop.f32.mrf.mxu1  ;;  %v519_v54 = vadd.f32 %v518_v42, %v517_v40  ;;  %v375_v42 = vadd.f32 %v553_v32, %v310_v21 }
 0x115   :  { %v520_v44 = vpop.f32.mrf.mxu0  ;;  %v559_v2 = vadd.f32 %v558_v43, %v557_v41  ;;  %v313_v43 = vadd.f32 %v516_v22, %v488_v53 }
 0x116   :  { %v560_v45 = vpop.f32.mrf.mxu1  ;;  %v318_v61 = vadd.f32 %v519_v54, %v488_v53 }
 0x117   :  { %v521_v46 = vpop.f32.mrf.mxu0 }
 0x118   :  { %v561_v47 = vpop.f32.mrf.mxu1  ;;  %v522_v62 = vadd.f32 %v521_v46, %v520_v44  ;;  %v383_v9 = vadd.f32 %v559_v2, %v318_v61 }
 0x119   :  { %v523_v48 = vpop.f32.mrf.mxu0  ;;  %v562_v17 = vadd.f32 %v561_v47, %v560_v45 }
 0x11a   :  { %v563_v49 = vpop.f32.mrf.mxu1  ;;  %v321_v10 = vadd.f32 %v522_v62, %v488_v53 }
 0x11b   :  { %v524_v50 = vpop.f32.mrf.mxu0 }
 0x11c   :  { %v564_v52 = vpop.f32.mrf.mxu1  ;;  %v525_v11 = vadd.f32 %v524_v50, %v523_v48  ;;  %v386_v25 = vadd.f32 %v562_v17, %v321_v10  ;;  %v556_v48 = vadd.f32 %v738_v39, %v736_v37 }
 0x11d   :  { %v526_v55 = vpop.f32.mrf.mxu0  ;;  %v565_v34 = vadd.f32 %v564_v52, %v563_v49 }
 0x11e   :  { %v566_v56 = vpop.f32.mrf.mxu1  ;;  %v326_v26 = vadd.f32 %v525_v11, %v488_v53  ;;  %v378_v52 = vadd.f32 %v556_v48, %v313_v43 }
 0x11f   :  { %v527_v57 = vpop.f32.mrf.mxu0 }
 0x120   :  { %v567_v60 = vpop.f32.mrf.mxu1  ;;  %v528_v27 = vadd.f32 %v527_v57, %v526_v55  ;;  %v391_v44 = vadd.f32 %v565_v34, %v326_v26 }
 0x121   :  { %v585_v63 = vpop.f32.mrf.mxu0  ;;  %v568_v35 = vadd.f32 %v567_v60, %v566_v56 }
 0x122   :  { %v597_v1 = vpop.f32.mrf.mxu1  ;;  %v329_v45 = vadd.f32 %v528_v27, %v488_v53 }
 0x123   :  { %v586_v3 = vpop.f32.mrf.mxu0 }
 0x124   :  { %v587_v7 = vadd.f32 %v586_v3, %v585_v63  ;;  %v598_v8 = vpop.f32.mrf.mxu1  ;;  %v394_v57 = vadd.f32 %v568_v35, %v329_v45 }
 0x125   :  { %v599_v12 = vadd.f32 %v598_v8, %v597_v1  ;;  %v588_v13 = vpop.f32.mrf.mxu0 }
 0x126   :  { %v432_v15 = vadd.f32 %v587_v7, %v367_v4  ;;  %v600_v16 = vpop.f32.mrf.mxu1 }
 0x127   :  { %v448_v18 = vadd.f32 %v599_v12, %v383_v9  ;;  %v589_v19 = vpop.f32.mrf.mxu0 }
 0x128   :  { %462 = vst [vmem:[#allocation7] sm:$0xff] %v432_v15  ;;  %v590_v23 = vadd.f32 %v589_v19, %v588_v13  ;;  %v601_v24 = vpop.f32.mrf.mxu1 }
 0x129   :  { %466 = vst [vmem:[#allocation7 + $0x20] sm:$0xff] %v448_v18  ;;  %v602_v28 = vadd.f32 %v601_v24, %v600_v16  ;;  %v591_v30 = vpop.f32.mrf.mxu0 }
 0x12a   :  { %v435_v29 = vadd.f32 %v590_v23, %v370_v20  ;;  %v603_v31 = vpop.f32.mrf.mxu1 }
 0x12b   :  { %v451_v40 = vadd.f32 %v602_v28, %v386_v25  ;;  %v592_v41 = vpop.f32.mrf.mxu0 }
 0x12c   :  { %463 = vst [vmem:[#allocation7 + $0x8] sm:$0xff] %v435_v29  ;;  %v593_v36 = vadd.f32 %v592_v41, %v591_v30  ;;  %v604_v38 = vpop.f32.mrf.mxu1 }
 0x12d   :  { %467 = vst [vmem:[#allocation7 + $0x28] sm:$0xff] %v451_v40  ;;  %v605_v46 = vadd.f32 %v604_v38, %v603_v31  ;;  %v594_v47 = vpop.f32.mrf.mxu0 }
 0x12e   :  { %v440_v50 = vadd.f32 %v593_v36, %v375_v42  ;;  %v606_v33 = vpop.f32.mrf.mxu1 }
 0x12f   :  { %v456_v51 = vadd.f32 %v605_v46, %v391_v44  ;;  %v595_v49 = vpop.f32.mrf.mxu0 }
 0x130   :  { %464 = vst [vmem:[#allocation7 + $0x10] sm:$0xff] %v440_v50  ;;  %v596_v54 = vadd.f32 %v595_v49, %v594_v47  ;;  %v607_v55 = vpop.f32.mrf.mxu1 }
 0x131   :  { %468 = vst [vmem:[#allocation7 + $0x30] sm:$0xff] %v456_v51  ;;  %v608_v53 = vadd.f32 %v607_v55, %v606_v33 }
 0x132   :  { %v443_v58 = vadd.f32 %v596_v54, %v378_v52 }
 0x133   :  { %v459_v59 = vadd.f32 %v608_v53, %v394_v57 }
 0x134   :  { %465 = vst [vmem:[#allocation7 + $0x18] sm:$0xff] %v443_v58 }
 0x135   :  { %469 = vst [vmem:[#allocation7 + $0x38] sm:$0xff] %v459_v59 }
 0x136   :  { %683 = shalt.err (!%p680_p0)
}
 0x137   :  { %481 = dma.vmem_to_hbm [thread:$0]  %s476_s26, 1024, %s755_s3, [#allocation4], %s702_s22, %s702_s22, %s703_s23  }
 0x138   :  { %696 = dma.done.wait [#allocation4], 1024  }
 0x139   :  { %697 = vsyncadd [#allocation4], 4294966272 }
 0x13a   :  { %485 = vsyncpa [#allocation3], 1 }
 0x13b   :  { %486 = vsyncpa [#allocation6], 1 }
 0x13c   :  { %487 = vsyncpa [#allocation4], 1 }

</bundles_post_ra>
